<compile_context>
chip_gen: v6e
topology: v6e:2x2x1
jax: 0.10.0
libtpu: 0.0.40
codegen_flags: <defaults>
</compile_context>

<pallas_src>
import jax
import jax.numpy as jnp
from jax.experimental import pallas as pl
from jax.experimental.pallas import tpu as pltpu

DIFFERECE_COL = 5
NUM = 26
N_INPUTS = NUM + DIFFERECE_COL          # 31
BN_EPS = 1e-5
SUBLANE = 8
DEFAULT_BLOCK_ROWS = 512                # batch tile (multiple of 256); sweepable

# (fan_in, fan_out) per Linear layer, in forward order.
LAYER_DIMS = [(N_INPUTS, 128), (128, 256), (256, 128), (128, 64)]
F_OUT = LAYER_DIMS[-1][1]               # 64


def _round_up(n, m):
    return (n + m - 1) // m * m


# ---------------------------------------------------------------------------
# Fused 4-layer (Linear + folded-BN + ReLU) kernel — one grid step = one
# batch tile; all weights/biases are VMEM-resident across steps.
# ---------------------------------------------------------------------------
def _mlp_fused_kernel(x_ref, w1, b1, w2, b2, w3, b3, w4, b4, o_ref):
    # Layer 1: K=31 (<5% of total MACs) -> keep f32, no input lane padding.
    h = jnp.dot(x_ref[...], w1[...], preferred_element_type=jnp.float32) + b1[...]
    h = jnp.maximum(h, 0.0)
    # Layers 2-4: bf16 MXU operands, f32 accumulation, f32 bias+ReLU epilogue.
    h = jnp.dot(h.astype(jnp.bfloat16), w2[...],
                preferred_element_type=jnp.float32) + b2[...]
    h = jnp.maximum(h, 0.0)
    h = jnp.dot(h.astype(jnp.bfloat16), w3[...],
                preferred_element_type=jnp.float32) + b3[...]
    h = jnp.maximum(h, 0.0)
    h = jnp.dot(h.astype(jnp.bfloat16), w4[...],
                preferred_element_type=jnp.float32) + b4[...]
    h = jnp.maximum(h, 0.0)
    o_ref[...] = h.astype(o_ref.dtype)


def _fold_bn(w, b, gamma, beta, mean, var):
    """Fold eval-mode BatchNorm1d into the preceding Linear (exact, incl. eps)."""
    scale = gamma * jax.lax.rsqrt(var + BN_EPS)          # (1, F_out)
    return w * scale, (b - mean) * scale + beta


@jax.jit
def mlp_forward(params, x):
    """MLP.forward(x) in eval mode. x: [B, 31] float32 -> [B, 64] float32."""
    B, f_in = x.shape
    assert f_in == N_INPUTS

    # Fold BN(eval) + bias into each linear at trace time (done once by XLA).
    folded = [_fold_bn(p["w"], p["b"], p["gamma"], p["beta"], p["mean"], p["var"])
              for p in params]
    (w1, b1), (w2, b2), (w3, b3), (w4, b4) = folded
    # bf16 MXU operands for the 128/256-wide layers (accumulation stays f32).
    w2 = w2.astype(jnp.bfloat16)
    w3 = w3.astype(jnp.bfloat16)
    w4 = w4.astype(jnp.bfloat16)

    # Batch tile: sublane-aligned, capped at DEFAULT_BLOCK_ROWS.
    tb = min(DEFAULT_BLOCK_ROWS, _round_up(B, SUBLANE))
    grid = (pl.cdiv(B, tb),)

    resident = lambda i: (0, 0)          # weights/biases: constant block index
    in_specs = [
        pl.BlockSpec((tb, N_INPUTS), lambda i: (i, 0)),   # x tile, pipelined
        pl.BlockSpec(w1.shape, resident), pl.BlockSpec(b1.shape, resident),
        pl.BlockSpec(w2.shape, resident), pl.BlockSpec(b2.shape, resident),
        pl.BlockSpec(w3.shape, resident), pl.BlockSpec(b3.shape, resident),
        pl.BlockSpec(w4.shape, resident), pl.BlockSpec(b4.shape, resident),
    ]
    out_specs = pl.BlockSpec((tb, F_OUT), lambda i: (i, 0))   # unpadded [B,64]

    return pl.pallas_call(
        _mlp_fused_kernel,
        out_shape=jax.ShapeDtypeStruct((B, F_OUT), jnp.float32),
        grid=grid,
        in_specs=in_specs,
        out_specs=out_specs,
        compiler_params=pltpu.CompilerParams(
            dimension_semantics=("parallel",),           # 2 TCs on v7x
            vmem_limit_bytes=32 * 1024 * 1024),
    )(x, w1, b1, w2, b2, w3, b3, w4, b4)


# ---------------------------------------------------------------------------
# Pure-JAX reference (eval-mode forward) for numerical validation.
# ---------------------------------------------------------------------------
def mlp_reference(params, x):
    h = x
    for p in params:
        scale = p["gamma"] * jax.lax.rsqrt(p["var"] + BN_EPS)
        h = (h @ p["w"]) * scale + (p["b"] - p["mean"]) * scale + p["beta"]
        h = jnp.maximum(h, 0.0)
    return h


# ---------------------------------------------------------------------------
# Deterministic parameter init mirroring the PyTorch module:
#   weights: kaiming_uniform_(nonlinearity='relu')  -> bound = sqrt(6/fan_in)
#   biases:  nn.Linear default                      -> bound = 1/sqrt(fan_in)
#   BatchNorm1d freshly initialized: gamma=1, beta=0, mean=0, var=1.
# Params contain only arrays (jit-friendly pytree).
# ---------------------------------------------------------------------------
def init_mlp(key):
    params = []
    for fi, fo in LAYER_DIMS:
        key, kw, kb = jax.random.split(key, 3)
        bound_w = (6.0 / fi) ** 0.5
        w = jax.random.uniform(kw, (fi, fo), jnp.float32, -bound_w, bound_w)
        bound_b = 1.0 / (fi ** 0.5)
        b = jax.random.uniform(kb, (1, fo), jnp.float32, -bound_b, bound_b)
        params.append(dict(
            w=w, b=b,
            gamma=jnp.ones((1, fo), jnp.float32),
            beta=jnp.zeros((1, fo), jnp.float32),
            mean=jnp.zeros((1, fo), jnp.float32),
            var=jnp.ones((1, fo), jnp.float32),
        ))
    return params


if __name__ == "__main__":
    key = jax.random.PRNGKey(0)
    kp, kx, kx2 = jax.random.split(key, 3)

    params = init_mlp(kp)

    # Small-shape check (single grid step).
    B = 8
    x = jax.random.normal(kx, (B, N_INPUTS), jnp.float32)    # [8, 31]
    out = jax.block_until_ready(mlp_forward(params, x))
    assert out.shape == (B, F_OUT), out.shape
    assert bool(jnp.all(jnp.isfinite(out)))
    assert bool(jnp.all(out >= 0.0))                          # final ReLU
    ref = mlp_reference(params, x)
    err = float(jnp.max(jnp.abs(out - ref)) / (jnp.max(jnp.abs(ref)) + 1e-6))
    assert err < 5e-2, f"small-batch mismatch: {err}"

    # Larger batch: exercises multi-step grid + masked partial last tile.
    B2 = 600
    x2 = jax.random.normal(kx2, (B2, N_INPUTS), jnp.float32)  # [600, 31]
    out2 = jax.block_until_ready(mlp_forward(params, x2))
    ref2 = mlp_reference(params, x2)
    err2 = float(jnp.max(jnp.abs(out2 - ref2)) / (jnp.max(jnp.abs(ref2)) + 1e-6))
    assert out2.shape == (B2, F_OUT), out2.shape
    assert err2 < 5e-2, f"tiled-batch mismatch: {err2}"

    # TODO(synk): Dropout(p=0.5) is identity in eval mode; no train-mode RNG or
    # batch-stats BatchNorm path is implemented.
    print("KERNEL_OK")
</pallas_src>

<mosaic_0001>
module attributes {stable_mosaic.version = 11 : i64} {
  func.func @_mlp_fused_kernel(%arg0: i32, %arg1: memref<8x31xf32, #tpu.memory_space<vmem>>, %arg2: memref<31x128xf32, #tpu.memory_space<vmem>>, %arg3: memref<1x128xf32, #tpu.memory_space<vmem>>, %arg4: memref<128x256xbf16, #tpu.memory_space<vmem>>, %arg5: memref<1x256xf32, #tpu.memory_space<vmem>>, %arg6: memref<256x128xbf16, #tpu.memory_space<vmem>>, %arg7: memref<1x128xf32, #tpu.memory_space<vmem>>, %arg8: memref<128x64xbf16, #tpu.memory_space<vmem>>, %arg9: memref<1x64xf32, #tpu.memory_space<vmem>>, %arg10: memref<8x64xf32, #tpu.memory_space<vmem>>) attributes {dimension_semantics = [#tpu.dimension_semantics<parallel>], iteration_bounds = array<i64: 1>, scalar_prefetch = 0 : i64, scratch_operands = 0 : i64, tpu.core_type = #tpu.core_type<tc>, window_params = [{transform_indices = @transform_0, window_bounds = array<i64: 8, 31>}, {pipeline_mode = #tpu.pipeline_mode<synchronous>, transform_indices = @transform_1, window_bounds = array<i64: 31, 128>}, {pipeline_mode = #tpu.pipeline_mode<synchronous>, transform_indices = @transform_2, window_bounds = array<i64: 1, 128>}, {pipeline_mode = #tpu.pipeline_mode<synchronous>, transform_indices = @transform_3, window_bounds = array<i64: 128, 256>}, {pipeline_mode = #tpu.pipeline_mode<synchronous>, transform_indices = @transform_4, window_bounds = array<i64: 1, 256>}, {pipeline_mode = #tpu.pipeline_mode<synchronous>, transform_indices = @transform_5, window_bounds = array<i64: 256, 128>}, {pipeline_mode = #tpu.pipeline_mode<synchronous>, transform_indices = @transform_6, window_bounds = array<i64: 1, 128>}, {pipeline_mode = #tpu.pipeline_mode<synchronous>, transform_indices = @transform_7, window_bounds = array<i64: 128, 64>}, {pipeline_mode = #tpu.pipeline_mode<synchronous>, transform_indices = @transform_8, window_bounds = array<i64: 1, 64>}, {transform_indices = @transform_9, window_bounds = array<i64: 8, 64>}]} {
    %c0 = arith.constant 0 : index
    %c0_0 = arith.constant 0 : index
    %0 = vector.load %arg1[%c0, %c0_0] : memref<8x31xf32, #tpu.memory_space<vmem>>, vector<8x31xf32>
    %c0_1 = arith.constant 0 : index
    %c0_2 = arith.constant 0 : index
    %1 = vector.load %arg2[%c0_1, %c0_2] : memref<31x128xf32, #tpu.memory_space<vmem>>, vector<31x128xf32>
    %cst = arith.constant dense<0.000000e+00> : vector<8x128xf32>
    %2 = tpu.matmul %0, %1, %cst {dimension_numbers = #tpu.dot_dimension_numbers<[1], [0], [0], [1], [0, 0, 1, 1], [], []>} : vector<8x31xf32>, vector<31x128xf32>, vector<8x128xf32> -> vector<8x128xf32>
    %c0_3 = arith.constant 0 : index
    %c0_4 = arith.constant 0 : index
    %3 = vector.load %arg3[%c0_3, %c0_4] : memref<1x128xf32, #tpu.memory_space<vmem>>, vector<1x128xf32>
    %4 = vector.broadcast %3 : vector<1x128xf32> to vector<8x128xf32>
    %5 = arith.addf %2, %4 : vector<8x128xf32>
    %cst_5 = arith.constant 0.000000e+00 : f32
    %6 = vector.broadcast %cst_5 : f32 to vector<8x128xf32>
    %7 = arith.maximumf %5, %6 : vector<8x128xf32>
    %8 = arith.truncf %7 : vector<8x128xf32> to vector<8x128xbf16>
    %c0_6 = arith.constant 0 : index
    %c0_7 = arith.constant 0 : index
    %9 = vector.load %arg4[%c0_6, %c0_7] : memref<128x256xbf16, #tpu.memory_space<vmem>>, vector<128x256xbf16>
    %cst_8 = arith.constant dense<0.000000e+00> : vector<8x256xf32>
    %10 = tpu.matmul %8, %9, %cst_8 {dimension_numbers = #tpu.dot_dimension_numbers<[1], [0], [0], [1], [0, 0, 1, 1], [], []>} : vector<8x128xbf16>, vector<128x256xbf16>, vector<8x256xf32> -> vector<8x256xf32>
    %c0_9 = arith.constant 0 : index
    %c0_10 = arith.constant 0 : index
    %11 = vector.load %arg5[%c0_9, %c0_10] : memref<1x256xf32, #tpu.memory_space<vmem>>, vector<1x256xf32>
    %12 = vector.broadcast %11 : vector<1x256xf32> to vector<8x256xf32>
    %13 = arith.addf %10, %12 : vector<8x256xf32>
    %cst_11 = arith.constant 0.000000e+00 : f32
    %14 = vector.broadcast %cst_11 : f32 to vector<8x256xf32>
    %15 = arith.maximumf %13, %14 : vector<8x256xf32>
    %16 = arith.truncf %15 : vector<8x256xf32> to vector<8x256xbf16>
    %c0_12 = arith.constant 0 : index
    %c0_13 = arith.constant 0 : index
    %17 = vector.load %arg6[%c0_12, %c0_13] : memref<256x128xbf16, #tpu.memory_space<vmem>>, vector<256x128xbf16>
    %cst_14 = arith.constant dense<0.000000e+00> : vector<8x128xf32>
    %18 = tpu.matmul %16, %17, %cst_14 {dimension_numbers = #tpu.dot_dimension_numbers<[1], [0], [0], [1], [0, 0, 1, 1], [], []>} : vector<8x256xbf16>, vector<256x128xbf16>, vector<8x128xf32> -> vector<8x128xf32>
    %c0_15 = arith.constant 0 : index
    %c0_16 = arith.constant 0 : index
    %19 = vector.load %arg7[%c0_15, %c0_16] : memref<1x128xf32, #tpu.memory_space<vmem>>, vector<1x128xf32>
    %20 = vector.broadcast %19 : vector<1x128xf32> to vector<8x128xf32>
    %21 = arith.addf %18, %20 : vector<8x128xf32>
    %cst_17 = arith.constant 0.000000e+00 : f32
    %22 = vector.broadcast %cst_17 : f32 to vector<8x128xf32>
    %23 = arith.maximumf %21, %22 : vector<8x128xf32>
    %24 = arith.truncf %23 : vector<8x128xf32> to vector<8x128xbf16>
    %c0_18 = arith.constant 0 : index
    %c0_19 = arith.constant 0 : index
    %25 = vector.load %arg8[%c0_18, %c0_19] : memref<128x64xbf16, #tpu.memory_space<vmem>>, vector<128x64xbf16>
    %cst_20 = arith.constant dense<0.000000e+00> : vector<8x64xf32>
    %26 = tpu.matmul %24, %25, %cst_20 {dimension_numbers = #tpu.dot_dimension_numbers<[1], [0], [0], [1], [0, 0, 1, 1], [], []>} : vector<8x128xbf16>, vector<128x64xbf16>, vector<8x64xf32> -> vector<8x64xf32>
    %c0_21 = arith.constant 0 : index
    %c0_22 = arith.constant 0 : index
    %27 = vector.load %arg9[%c0_21, %c0_22] : memref<1x64xf32, #tpu.memory_space<vmem>>, vector<1x64xf32>
    %28 = vector.broadcast %27 : vector<1x64xf32> to vector<8x64xf32>
    %29 = arith.addf %26, %28 : vector<8x64xf32>
    %cst_23 = arith.constant 0.000000e+00 : f32
    %30 = vector.broadcast %cst_23 : f32 to vector<8x64xf32>
    %31 = arith.maximumf %29, %30 : vector<8x64xf32>
    %c0_24 = arith.constant 0 : index
    %c0_25 = arith.constant 0 : index
    %32 = vector.load %arg10[%c0_24, %c0_25] : memref<8x64xf32, #tpu.memory_space<vmem>>, vector<8x64xf32>
    tpu.vector_store %arg10[%c0_24, %c0_25], %31 {strides = array<i32>} : memref<8x64xf32, #tpu.memory_space<vmem>>, vector<8x64xf32>,
    return
  }
  func.func @transform_0(%arg0: i32) -> (i32, i32) {
    %c0_i32 = arith.constant 0 : i32
    %c0_i32_0 = arith.constant 0 : i32
    return %arg0, %c0_i32 : i32, i32
  }
  func.func @transform_1(%arg0: i32) -> (i32, i32) {
    %c0_i32 = arith.constant 0 : i32
    %c0_i32_0 = arith.constant 0 : i32
    %c0_i32_1 = arith.constant 0 : i32
    return %c0_i32, %c0_i32_0 : i32, i32
  }
  func.func @transform_2(%arg0: i32) -> (i32, i32) {
    %c0_i32 = arith.constant 0 : i32
    %c0_i32_0 = arith.constant 0 : i32
    %c0_i32_1 = arith.constant 0 : i32
    return %c0_i32, %c0_i32_0 : i32, i32
  }
  func.func @transform_3(%arg0: i32) -> (i32, i32) {
    %c0_i32 = arith.constant 0 : i32
    %c0_i32_0 = arith.constant 0 : i32
    %c0_i32_1 = arith.constant 0 : i32
    return %c0_i32, %c0_i32_0 : i32, i32
  }
  func.func @transform_4(%arg0: i32) -> (i32, i32) {
    %c0_i32 = arith.constant 0 : i32
    %c0_i32_0 = arith.constant 0 : i32
    %c0_i32_1 = arith.constant 0 : i32
    return %c0_i32, %c0_i32_0 : i32, i32
  }
  func.func @transform_5(%arg0: i32) -> (i32, i32) {
    %c0_i32 = arith.constant 0 : i32
    %c0_i32_0 = arith.constant 0 : i32
    %c0_i32_1 = arith.constant 0 : i32
    return %c0_i32, %c0_i32_0 : i32, i32
  }
  func.func @transform_6(%arg0: i32) -> (i32, i32) {
    %c0_i32 = arith.constant 0 : i32
    %c0_i32_0 = arith.constant 0 : i32
    %c0_i32_1 = arith.constant 0 : i32
    return %c0_i32, %c0_i32_0 : i32, i32
  }
  func.func @transform_7(%arg0: i32) -> (i32, i32) {
    %c0_i32 = arith.constant 0 : i32
    %c0_i32_0 = arith.constant 0 : i32
    %c0_i32_1 = arith.constant 0 : i32
    return %c0_i32, %c0_i32_0 : i32, i32
  }
  func.func @transform_8(%arg0: i32) -> (i32, i32) {
    %c0_i32 = arith.constant 0 : i32
    %c0_i32_0 = arith.constant 0 : i32
    %c0_i32_1 = arith.constant 0 : i32
    return %c0_i32, %c0_i32_0 : i32, i32
  }
  func.func @transform_9(%arg0: i32) -> (i32, i32) {
    %c0_i32 = arith.constant 0 : i32
    %c0_i32_0 = arith.constant 0 : i32
    return %arg0, %c0_i32 : i32, i32
  }
}

</mosaic_0001>

<bundles_post_ra>
// kernel: mlp_forward.1
= control target key start
LH: loop header
LB: loop body
LE: loop exit
PB: predicated region body
PF: predicated region fallthrough
CT: control target
= control target key end

     0   :  { %vm50_vm0 = vcmask 1046528   ;;  %v770_v1 = vmov 0.0   ;;  %vm771_vm1 = vmmov 0   ;;  %vm46_vm2 = vcmask 252928   ;;  %s990_s0 = inlined_call_operand.vmem [shape: f32[8,31], index: 0, kind: input, shape index: {}]   ;;  %s991_s1 = inlined_call_operand.vmem [shape: f32[31,128], index: 1, kind: input, shape index: {}]   ;;  %s992_s2 = inlined_call_operand.vmem [shape: f32[1,128], index: 2, kind: input, shape index: {}]   ;;  %s993_s3 = inlined_call_operand.vmem [shape: bf16[128,256], index: 3, kind: input, shape index: {}]   ;;  %s994_s4 = inlined_call_operand.vmem [shape: f32[1,256], index: 4, kind: input, shape index: {}]   ;;  %s995_s5 = inlined_call_operand.vmem [shape: bf16[256,128], index: 5, kind: input, shape index: {}]   ;;  %s996_s6 = inlined_call_operand.vmem [shape: f32[1,128], index: 6, kind: input, shape index: {}]   ;;  %s997_s7 = inlined_call_operand.vmem [shape: bf16[128,64], index: 7, kind: input, shape index: {}]   ;;  %s998_s8 = inlined_call_operand.vmem [shape: f32[1,64], index: 8, kind: input, shape index: {}]   ;;  %s999_s9 = inlined_call_operand.hbm [shape: f32[8,64], index: 9, kind: output, shape index: {}]  }
   0x1   :  { %v38_v0 = vld [vmem:[%s991_s1 + $0x18] sm:$0x7f]  ;;  %665 = vmatprep.subr.mxu0 %v770_v1  ;;  %v37_v2 = vld [vmem:[%s991_s1 + $0x10] sm:$0xff]  ;;  %v36_v3 = vld [vmem:[%s991_s1 + $0x8] sm:$0xff]  ;;  %673 = vmatprep.mubr.msk.f32.mxu0 %vm771_vm1, %v770_v1 }
   0x2   :  { %666 = vmatpush3.msk.msra.mxu0 %vm50_vm0, %v38_v0  ;;  %v700_v4 = vld [vmem:[%s993_s3 + $0x74] ss:$8 sps:$4 sm:$0xff]   ;;  %v702_v5 = vld [vmem:[%s993_s3 + $0x70] ss:$8 sps:$4 sm:$0xff]   ;;  %v703_v6 = vld [vmem:[%s993_s3 + $0x64] ss:$8 sps:$4 sm:$0xff]  }
   0x3   :  { %667 = vmatprep.subr.mxu0 %v770_v1  ;;  %234 = vmatprep.subr.bf16.mxu1 %v700_v4  ;;  %v35_v7 = vld [vmem:[%s991_s1] sm:$0xff]  ;;  %v706_v10 = vld [vmem:[%s993_s3 + $0x54] ss:$8 sps:$4 sm:$0xff]   ;;  %v708_v11 = vld [vmem:[%s993_s3 + $0x50] ss:$8 sps:$4 sm:$0xff]  }
   0x4   :  { %668 = vmatpush3.msra.mxu0 %v37_v2  ;;  %235 = vmatpush1.bf16.msra.mxu1 %v702_v5  ;;  %v705_v8 = vld [vmem:[%s993_s3 + $0x60] ss:$8 sps:$4 sm:$0xff]   ;;  %v709_v12 = vld [vmem:[%s993_s3 + $0x44] ss:$8 sps:$4 sm:$0xff]   ;;  %v712_v14 = vld [vmem:[%s993_s3 + $0x34] ss:$8 sps:$4 sm:$0xff]  }
   0x5   :  { %669 = vmatprep.subr.mxu0 %v770_v1  ;;  %v34_v9 = vld [vmem:[%s990_s0] sm:$0xff]  ;;  %236 = vmatprep.subr.bf16.mxu1 %v703_v6  ;;  %v714_v15 = vld [vmem:[%s993_s3 + $0x30] ss:$8 sps:$4 sm:$0xff]   ;;  %v718_v18 = vld [vmem:[%s993_s3 + $0x14] ss:$8 sps:$4 sm:$0xff]  }
   0x6   :  { %670 = vmatpush3.msra.mxu0 %v36_v3  ;;  %v711_v13 = vld [vmem:[%s993_s3 + $0x40] ss:$8 sps:$4 sm:$0xff]   ;;  %v715_v16 = vld [vmem:[%s993_s3 + $0x24] ss:$8 sps:$4 sm:$0xff]  }
   0x7   :  { %671 = vmatprep.subr.mxu0 %v770_v1  ;;  %v717_v17 = vld [vmem:[%s993_s3 + $0x20] ss:$8 sps:$4 sm:$0xff]  }
   0x8   :  { %672 = vmatpush3.msra.mxu0 %v35_v7  ;;  %237 = vmatpush1.bf16.msra.mxu1 %v705_v8 }
   0x9   :  { %674 = vmatmul.mubr.msk.f32.vlgmr.msra.gmra.mxu0 %vm46_vm2, %v34_v9  ;;  %238 = vmatprep.subr.bf16.mxu1 %v706_v10 }
   0xc   :  { %239 = vmatpush1.bf16.msra.mxu1 %v708_v11 }
   0xd   :  { %240 = vmatprep.subr.bf16.mxu1 %v709_v12 }
  0x10   :  { %241 = vmatpush1.bf16.msra.mxu1 %v711_v13 }
  0x11   :  { %242 = vmatprep.subr.bf16.mxu1 %v712_v14 }
  0x14   :  { %243 = vmatpush1.bf16.msra.mxu1 %v714_v15 }
  0x15   :  { %244 = vmatprep.subr.bf16.mxu1 %v715_v16 }
  0x18   :  { %245 = vmatpush1.bf16.msra.mxu1 %v717_v17 }
  0x19   :  { %246 = vmatprep.subr.bf16.mxu1 %v718_v18 }
  0x1a   :  { %14 = vsyncpa [#allocation3], 0  ;;  %v720_v19 = vld [vmem:[%s993_s3 + $0x10] ss:$8 sps:$4 sm:$0xff]   ;;  %v721_v20 = vld [vmem:[%s993_s3 + $0x4] ss:$8 sps:$4 sm:$0xff]   ;;  %v144_v50 = vlaneseq }
  0x1b   :  { %v723_v21 = vld [vmem:[%s993_s3] ss:$8 sps:$4 sm:$0xff]   ;;  %v772_v22 = vmov 0   ;;  %v724_v23 = vld [vmem:[%s995_s5 + $0x78] sm:$0xff]   ;;  %v726_v25 = vld [vmem:[%s995_s5 + $0x70] sm:$0xff]   ;;  %vm568_vm3 = vcmask 523264  }
  0x1c   :  { %247 = vmatpush1.bf16.msra.mxu1 %v720_v19  ;;  %266 = vmatprep.mubr.bf16.mxu1 %v772_v22  ;;  %v725_v24 = vld [vmem:[%s995_s5 + $0x38] sm:$0xff]   ;;  %v727_v26 = vld [vmem:[%s995_s5 + $0x30] sm:$0xff]   ;;  %v728_v27 = vld [vmem:[%s995_s5 + $0x68] sm:$0xff]   ;;  %v145_v51 = vshrl.u32 %v144_v50, 7 }
  0x1d   :  { %248 = vmatprep.subr.bf16.mxu1 %v721_v20  ;;  %634 = vmatprep.subr.bf16.mxu0 %v724_v23  ;;  %v729_v28 = vld [vmem:[%s995_s5 + $0x28] sm:$0xff]   ;;  %v730_v29 = vld [vmem:[%s995_s5 + $0x60] sm:$0xff]   ;;  %v732_v31 = vld [vmem:[%s995_s5 + $0x58] sm:$0xff]  }
  0x1e   :  { %635 = vmatpush3.bf16.msra.mxu0 %v725_v24  ;;  %v731_v30 = vld [vmem:[%s995_s5 + $0x20] sm:$0xff]   ;;  %v733_v32 = vld [vmem:[%s995_s5 + $0x18] sm:$0xff]   ;;  %v734_v33 = vld [vmem:[%s995_s5 + $0x50] sm:$0xff]   ;;  %v146_v52 = vsub.s32 0, %v145_v51  ;;  %v150_v54 = vsub.s32 1, %v145_v51 }
  0x1f   :  { %636 = vmatprep.subr.bf16.mxu0 %v726_v25  ;;  %v735_v34 = vld [vmem:[%s995_s5 + $0x10] sm:$0xff]   ;;  %v584_v35 = vld [vmem:[%s992_s2] ss:$0 sm:$0xff]  ;;  %v736_v41 = vld [vmem:[%s995_s5 + $0x48] sm:$0xff]  }
  0x20   :  { %249 = vmatpush1.bf16.msra.mxu1 %v723_v21  ;;  %v737_v42 = vld [vmem:[%s995_s5 + $0x8] sm:$0xff]   ;;  %v738_v43 = vld [vmem:[%s995_s5 + $0x40] sm:$0xff]   ;;  %v740_v45 = vld [vmem:[%s997_s7 + $0x38] sm:$0xff]  }
  0x21   :  { %676 = vmatprep.subr.bf16.mxu1 %v770_v1  ;;  %v739_v44 = vld [vmem:[%s995_s5] sm:$0xff]   ;;  %v741_v46 = vld [vmem:[%s997_s7 + $0x30] sm:$0xff]   ;;  %v742_v47 = vld [vmem:[%s997_s7 + $0x28] sm:$0xff]  }
  0x22   :  { %637 = vmatpush3.bf16.msra.mxu0 %v727_v26  ;;  %v743_v48 = vld [vmem:[%s997_s7 + $0x20] sm:$0xff]   ;;  %v744_v49 = vld [vmem:[%s997_s7 + $0x18] sm:$0xff]   ;;  %v745_v4 = vld [vmem:[%s997_s7 + $0x10] sm:$0xff]  }
  0x23   :  { %638 = vmatprep.subr.bf16.mxu0 %v728_v27  ;;  %v142_v53 = vld [vmem:[%s994_s4] sm:$0x3]  ;;  %v746_v5 = vld [vmem:[%s997_s7 + $0x8] sm:$0xff]  }
  0x24   :  { %v147_v55 = vrot.slane %v142_v53, %v146_v52  ;;  %v151_v56 = vrot.slane %v142_v53, %v150_v54  ;;  %v747_v6 = vld [vmem:[%s997_s7] sm:$0xff]   ;;  %s773_s7 = smov [#allocation2]  }
  0x25   :  { %v603_v8 = vld [vmem:[%s996_s6] ss:$0 sm:$0xff]  ;;  %s576_s0 = sshll.u32 %s773_s7, 4  ;;  %s577_s0 = int_to_ptr.vmem [resolvable:$true] %s576_s0 }
  0x26   :  { %639 = vmatpush3.bf16.msra.mxu0 %v729_v28  ;;  %s748_s6 = scalar_lea.vmem %s577_s0, 128  ;;  %p753_p1 = scmp.lt.s32.totalorder %s577_s0, %s577_s0 }
  0x27   :  { %640 = vmatprep.subr.bf16.mxu0 %v730_v29  ;;  %p749_p0 = scmp.ne.s32.totalorder %s577_s0, %s748_s6  ;;  %p754_p2 = scmp.lt.s32.totalorder %s748_s6, %s748_s6 }
  0x29   :  { %p755_p3 = por %p754_p2, %p753_p1 }
  0x2a   :  { %641 = vmatpush3.bf16.msra.mxu0 %v731_v30 }
  0x2b   :  { %642 = vmatprep.subr.bf16.mxu0 %v732_v31  ;;  %p756_p4 = pnand %p755_p3, %p749_p0 }
  0x2e   :  { %643 = vmatpush3.bf16.msra.mxu0 %v733_v32 }
  0x2f   :  { %644 = vmatprep.subr.bf16.mxu0 %v734_v33 }
  0x32   :  { %645 = vmatpush3.bf16.msra.mxu0 %v735_v34 }
  0x33   :  { %646 = vmatprep.subr.bf16.mxu0 %v736_v41 }
  0x36   :  { %647 = vmatpush3.bf16.msra.mxu0 %v737_v42 }
  0x37   :  { %648 = vmatprep.subr.bf16.mxu0 %v738_v43 }
  0x3a   :  { %649 = vmatpush3.bf16.msra.mxu0 %v739_v44 }
  0xc9   :  { %v120_v36 = vpop.f32.mrf.mxu0 }
  0xca   :  { %v121_v37 = vadd.f32 %v584_v35, %v120_v36 }
  0xcb   :  { %v675_v38 = vpop.f32.mrf.mxu0 }
  0xcc   :  { %v124_v39 = vmax.f32 %v121_v37, 0.0 }
  0xce   :  { %v125_v40 = vpack.c.bf16 %v124_v39, %v124_v39 }
  0xd0   :  { %267 = vmatmul.mubr.bf16.vlgmr.msra.gmra.mxu1 %v125_v40 }
  0xd1   :  { %692 = vmatprep.mubr.msk.bf16.mxu1 %vm771_vm1, %v770_v1  ;;  %677 = vmatpush3.bf16.msra.mxu1 %v740_v45 }
  0xd2   :  { %678 = vmatprep.subr.bf16.mxu1 %v770_v1 }
  0xd5   :  { %679 = vmatpush3.bf16.msra.mxu1 %v741_v46 }
  0xd6   :  { %680 = vmatprep.subr.bf16.mxu1 %v770_v1 }
  0xd9   :  { %681 = vmatpush3.bf16.msra.mxu1 %v742_v47 }
  0xda   :  { %682 = vmatprep.subr.bf16.mxu1 %v770_v1 }
  0xdd   :  { %683 = vmatpush3.bf16.msra.mxu1 %v743_v48 }
  0xde   :  { %684 = vmatprep.subr.bf16.mxu1 %v770_v1 }
  0xe1   :  { %685 = vmatpush3.bf16.msra.mxu1 %v744_v49 }
  0xe2   :  { %686 = vmatprep.subr.bf16.mxu1 %v770_v1 }
  0xe5   :  { %687 = vmatpush3.bf16.msra.mxu1 %v745_v4 }
  0xe6   :  { %688 = vmatprep.subr.bf16.mxu1 %v770_v1 }
  0xe9   :  { %689 = vmatpush3.bf16.msra.mxu1 %v746_v5 }
  0xea   :  { %690 = vmatprep.subr.bf16.mxu1 %v770_v1  ;;  %v620_v1 = vld [vmem:[%s998_s8] ss:$0 sm:$0xff] }
  0xed   :  { %691 = vmatpush3.bf16.msra.mxu1 %v747_v6 }
 0x190   :  { %v268_v57 = vpop.f32.mrf.mxu1 }
 0x191   :  { %v269_v58 = vadd.f32 %v268_v57, %v147_v55 }
 0x192   :  { %v270_v59 = vpop.f32.mrf.mxu1 }
 0x193   :  { %v271_v60 = vadd.f32 %v270_v59, %v151_v56  ;;  %v275_v61 = vmax.f32 %v269_v58, 0.0 }
 0x194   :  { %v272_v62 = vpop.f32.mrf.mxu1 }
 0x195   :  { %v276_v63 = vmax.f32 %v271_v60, 0.0  ;;  %v277_v3 = vpack.c.bf16 %v275_v61, %v275_v61 }
 0x196   :  { %v273_v0 = vpop.f32.mrf.mxu1 }
 0x197   :  { %v278_v2 = vpack.c.bf16 %v276_v63, %v276_v63 }
 0x199   :  { %446 = vmatprep.mubr.bf16.mxu0 %v278_v2 }
 0x19a   :  { %447 = vmatmul.mubr.bf16.vlgmr.msra.gmra.mxu0 %v277_v3 }
 0x25a   :  { %v650_v7 = vpop.f32.mrf.mxu0 }
 0x25c   :  { %v651_v9 = vpop.f32.mrf.mxu0 }
 0x25d   :  { %v652_v10 = vadd.f32 %v651_v9, %v650_v7 }
 0x25e   :  { %v653_v11 = vpop.f32.mrf.mxu0 }
 0x25f   :  { %v449_v12 = vadd.f32 %v652_v10, %v603_v8 }
 0x260   :  { %v654_v13 = vpop.f32.mrf.mxu0 }
 0x261   :  { %v454_v14 = vmax.f32 %v449_v12, 0.0 }
 0x263   :  { %v455_v15 = vpack.c.bf16 %v454_v14, %v454_v14 }
 0x265   :  { %693 = vmatmul.mubr.bf16.vlgmr.msra.gmra.mxu1 %v455_v15 }
 0x325   :  { %v561_v16 = vpop.f32.mrf.mxu1 }
 0x326   :  { %v562_v17 = vadd.f32 %v620_v1, %v561_v16 }
 0x327   :  { %v694_v18 = vpop.f32.mrf.mxu1 }
 0x328   :  { %v567_v19 = vmax.f32 %v562_v17, 0.0 }
 0x329   :  { %v564_v20 = vpop.f32.mrf.mxu1 }
 0x32a   :  { %569 = vst.msk [vmem:[#allocation2] sm:$0xff] %vm568_vm3, %v567_v19 }
 0x32b   :  { %v695_v21 = vpop.f32.mrf.mxu1 }
 0x32c   :  { %759 = shalt.err (!%p756_p4)
}
 0x32d   :  { %579 = dma.vmem_to_hbm [thread:$0]  %s577_s0, 128, %s999_s9, [#allocation3]  }
 0x32e   :  { %768 = dma.done.wait [#allocation3], 128  }
 0x32f   :  { %769 = vsyncadd [#allocation3], 4294967168 }
 0x330   :  { %583 = vsyncpa [#allocation3], 1 }

</bundles_post_ra>
